<compile_context>
chip_gen: v6e
topology: v6e:2x2x1
jax: 0.10.0
libtpu: 0.0.40
codegen_flags: <defaults>
</compile_context>

<pallas_src>
import functools

import jax
import jax.numpy as jnp
from jax.experimental import pallas as pl
from jax.experimental.pallas import tpu as pltpu


# ---------------------------------------------------------------------------
# Fused kernel: conv stack + head for the whole batch in one grid step.
# refs = (w_0, b_0, ..., w_{n-1}, b_{n-1}, w_fc, b_fc, o_ref)
#   w_i  : (3*Cin_i, 32)  im2col-flattened conv weight (row order: k-major, cin-minor)
#   b_i  : (1, 32)
#   w_fc : (32, 1), b_fc : (1, 1)
#   o_ref: (N, 1)
# ---------------------------------------------------------------------------
def _fused_conv1d_model_kernel(x_ref, *refs, num_conv_layers):
    o_ref = refs[-1]
    w_fc_ref = refs[-3]
    b_fc_ref = refs[-2]
    conv_refs = refs[:-3]

    N, L, _ = x_ref.shape

    pooled_rows = []
    # N is tiny and static -> unrolled Python loop; every intermediate stays in
    # VMEM/vregs, only the final (N, 1) result is stored to HBM.
    for n in range(N):
        h = x_ref[n]  # (L, Cin), f32
        for i in range(num_conv_layers):
            w = conv_refs[2 * i][...]       # (3*Cin_i, 32)
            b = conv_refs[2 * i + 1][...]   # (1, 32)
            cin = h.shape[-1]
            # In-kernel zero padding (pad=1) -> no jnp.pad / extra HBM traffic.
            zero = jnp.zeros((1, cin), jnp.float32)
            hp = jnp.concatenate([zero, h, zero], axis=0)            # (L+2, Cin)
            # im2col: row l = [x[l-1], x[l], x[l+1]] -> one MXU matmul per layer.
            hc = jnp.concatenate(
                [hp[0:L, :], hp[1:L + 1, :], hp[2:L + 2, :]], axis=-1)  # (L, 3*Cin)
            h = jnp.maximum(
                jnp.dot(hc, w, preferred_element_type=jnp.float32) + b, 0.0)
        # avg_pool1d(kernel=L) + flatten == mean over L.
        pooled_rows.append(jnp.mean(h, axis=0, keepdims=True))       # (1, 32)

    pooled = jnp.concatenate(pooled_rows, axis=0)                    # (N, 32)
    y = jnp.dot(pooled, w_fc_ref[...],
                preferred_element_type=jnp.float32) + b_fc_ref[...]  # (N, 1)
    # Numerically stable sigmoid (no exp(+large) -> inf intermediate).
    e = jnp.exp(-jnp.abs(y))
    sig = jnp.where(y >= 0.0, 1.0 / (1.0 + e), e / (1.0 + e))
    o_ref[...] = sig * 1000.0


# ---------------------------------------------------------------------------
# Wrapper: one pallas_call for the whole forward pass.
# ---------------------------------------------------------------------------
def conv1d_model_forward(x_ncl, conv_params, fc_params):
    """x_ncl: (N, C_in, L) float32 (PyTorch NCL layout) -> (N, 1) float32."""
    N, _, L = x_ncl.shape
    # NCL -> NLC once (tiny; lives in the same jit region as the kernel call).
    x = jnp.transpose(x_ncl, (0, 2, 1)).astype(jnp.float32)
    Cin = x.shape[-1]

    operands = [x]
    in_specs = [pl.BlockSpec((N, L, Cin), lambda i: (0, 0, 0))]
    for (w, b) in conv_params:
        K, ci, co = w.shape
        w_flat = w.reshape(K * ci, co)  # im2col weight layout (k-major, cin-minor)
        operands += [w_flat.astype(jnp.float32), b.astype(jnp.float32)]
        in_specs += [
            pl.BlockSpec((K * ci, co), lambda i: (0, 0)),
            pl.BlockSpec((1, co), lambda i: (0, 0)),
        ]
    w_fc, b_fc = fc_params
    operands += [w_fc.astype(jnp.float32), b_fc.astype(jnp.float32)]
    in_specs += [
        pl.BlockSpec(w_fc.shape, lambda i: (0, 0)),
        pl.BlockSpec(b_fc.shape, lambda i: (0, 0)),
    ]

    kernel = functools.partial(
        _fused_conv1d_model_kernel, num_conv_layers=len(conv_params))

    # Single grid step: total working set is a few KiB, far below VMEM on
    # v5e/v6e (128 MiB) and v7x (64 MiB).
    # TODO(synk): if N or L ever grow large, add a batch grid axis marked
    # "parallel" (v7x 2-TC sharding) and tile L with a halo'd index_map,
    # re-deriving block sizes for v7x's smaller VMEM.
    return pl.pallas_call(
        kernel,
        out_shape=jax.ShapeDtypeStruct((N, 1), jnp.float32),
        grid=(1,),
        in_specs=in_specs,
        out_specs=pl.BlockSpec((N, 1), lambda i: (0, 0)),
        compiler_params=pltpu.CompilerParams(
            dimension_semantics=("arbitrary",)),
    )(*operands)


# ---------------------------------------------------------------------------
# Deterministic synthetic parameter init (matches torch layer shapes).
# ---------------------------------------------------------------------------
def init_params(key, input_channels, num_conv_layers, hidden=32, ksize=3):
    conv_params = []
    in_c = input_channels
    for _ in range(num_conv_layers):
        key, kw, kb = jax.random.split(key, 3)
        # torch Conv1d weight (Cout, Cin, K) stored transposed as (K, Cin, Cout).
        w = jax.random.uniform(kw, (ksize, in_c, hidden), jnp.float32, -0.1, 0.1)
        b = jax.random.uniform(kb, (1, hidden), jnp.float32, -0.1, 0.1)
        conv_params.append((w, b))
        in_c = hidden
    key, kw, kb = jax.random.split(key, 3)
    w_fc = jax.random.uniform(kw, (hidden, 1), jnp.float32, -0.1, 0.1)  # Linear(32,1).T
    b_fc = jax.random.uniform(kb, (1, 1), jnp.float32, -0.1, 0.1)
    return conv_params, (w_fc, b_fc)


if __name__ == "__main__":
    # Small shapes consistent with the module: batch=2, input_channels=4, L=16,
    # num_conv_layers=2, hidden=32.
    N, C_IN, L = 2, 4, 16
    NUM_CONV_LAYERS = 2

    key = jax.random.PRNGKey(0)
    key, kx, kp = jax.random.split(key, 3)
    x = jax.random.normal(kx, (N, C_IN, L), jnp.float32)  # PyTorch NCL input

    conv_params, fc_params = init_params(kp, C_IN, NUM_CONV_LAYERS)

    forward = jax.jit(conv1d_model_forward)
    out = forward(x, conv_params, fc_params)
    out = jax.block_until_ready(out)

    assert out.shape == (N, 1), out.shape
    assert out.dtype == jnp.float32
    assert bool(jnp.all(jnp.isfinite(out)))
    assert bool(jnp.all((out >= 0.0) & (out <= 1000.0)))
    print("KERNEL_OK")
</pallas_src>

<mosaic_0001>
module attributes {stable_mosaic.version = 11 : i64} {
  func.func @_fused_conv1d_model_kernel(%arg0: i32, %arg1: memref<2x16x4xf32, #tpu.memory_space<vmem>>, %arg2: memref<12x32xf32, #tpu.memory_space<vmem>>, %arg3: memref<1x32xf32, #tpu.memory_space<vmem>>, %arg4: memref<96x32xf32, #tpu.memory_space<vmem>>, %arg5: memref<1x32xf32, #tpu.memory_space<vmem>>, %arg6: memref<32x1xf32, #tpu.memory_space<vmem>>, %arg7: memref<1x1xf32, #tpu.memory_space<vmem>>, %arg8: memref<2x1xf32, #tpu.memory_space<vmem>>) attributes {dimension_semantics = [#tpu.dimension_semantics<arbitrary>], iteration_bounds = array<i64: 1>, scalar_prefetch = 0 : i64, scratch_operands = 0 : i64, tpu.core_type = #tpu.core_type<tc>, window_params = [{pipeline_mode = #tpu.pipeline_mode<synchronous>, transform_indices = @transform_0, window_bounds = array<i64: 2, 16, 4>}, {pipeline_mode = #tpu.pipeline_mode<synchronous>, transform_indices = @transform_1, window_bounds = array<i64: 12, 32>}, {pipeline_mode = #tpu.pipeline_mode<synchronous>, transform_indices = @transform_2, window_bounds = array<i64: 1, 32>}, {pipeline_mode = #tpu.pipeline_mode<synchronous>, transform_indices = @transform_3, window_bounds = array<i64: 96, 32>}, {pipeline_mode = #tpu.pipeline_mode<synchronous>, transform_indices = @transform_4, window_bounds = array<i64: 1, 32>}, {pipeline_mode = #tpu.pipeline_mode<synchronous>, transform_indices = @transform_5, window_bounds = array<i64: 32, 1>}, {pipeline_mode = #tpu.pipeline_mode<synchronous>, transform_indices = @transform_6, window_bounds = array<i64: 1, 1>}, {pipeline_mode = #tpu.pipeline_mode<synchronous>, transform_indices = @transform_7, window_bounds = array<i64: 2, 1>}]} {
    %c0 = arith.constant 0 : index
    %c0_0 = arith.constant 0 : index
    %c0_1 = arith.constant 0 : index
    %0 = vector.load %arg1[%c0, %c0_0, %c0_1] : memref<2x16x4xf32, #tpu.memory_space<vmem>>, vector<1x16x4xf32>
    %1 = vector.shape_cast %0 : vector<1x16x4xf32> to vector<16x4xf32>
    %c0_2 = arith.constant 0 : index
    %c0_3 = arith.constant 0 : index
    %2 = vector.load %arg2[%c0_2, %c0_3] : memref<12x32xf32, #tpu.memory_space<vmem>>, vector<12x32xf32>
    %c0_4 = arith.constant 0 : index
    %c0_5 = arith.constant 0 : index
    %3 = vector.load %arg3[%c0_4, %c0_5] : memref<1x32xf32, #tpu.memory_space<vmem>>, vector<1x32xf32>
    %cst = arith.constant 0.000000e+00 : f32
    %4 = vector.broadcast %cst : f32 to vector<1x4xf32>
    %5 = tpu.concatenate %4, %1, %4 in 0 : vector<1x4xf32>, vector<16x4xf32>, vector<1x4xf32> -> vector<18x4xf32>
    %6 = vector.extract_strided_slice %5 {offsets = [0, 0], sizes = [16, 4], strides = [1, 1]} : vector<18x4xf32> to vector<16x4xf32>
    %7 = vector.extract_strided_slice %5 {offsets = [1, 0], sizes = [16, 4], strides = [1, 1]} : vector<18x4xf32> to vector<16x4xf32>
    %8 = vector.extract_strided_slice %5 {offsets = [2, 0], sizes = [16, 4], strides = [1, 1]} : vector<18x4xf32> to vector<16x4xf32>
    %9 = tpu.concatenate %6, %7, %8 in 1 : vector<16x4xf32>, vector<16x4xf32>, vector<16x4xf32> -> vector<16x12xf32>
    %cst_6 = arith.constant dense<0.000000e+00> : vector<16x32xf32>
    %10 = tpu.matmul %9, %2, %cst_6 {dimension_numbers = #tpu.dot_dimension_numbers<[1], [0], [0], [1], [0, 0, 1, 1], [], []>} : vector<16x12xf32>, vector<12x32xf32>, vector<16x32xf32> -> vector<16x32xf32>
    %11 = vector.broadcast %3 : vector<1x32xf32> to vector<16x32xf32>
    %12 = arith.addf %10, %11 : vector<16x32xf32>
    %cst_7 = arith.constant 0.000000e+00 : f32
    %13 = vector.broadcast %cst_7 : f32 to vector<16x32xf32>
    %14 = arith.maximumf %12, %13 : vector<16x32xf32>
    %c0_8 = arith.constant 0 : index
    %c0_9 = arith.constant 0 : index
    %15 = vector.load %arg4[%c0_8, %c0_9] : memref<96x32xf32, #tpu.memory_space<vmem>>, vector<96x32xf32>
    %c0_10 = arith.constant 0 : index
    %c0_11 = arith.constant 0 : index
    %16 = vector.load %arg5[%c0_10, %c0_11] : memref<1x32xf32, #tpu.memory_space<vmem>>, vector<1x32xf32>
    %cst_12 = arith.constant 0.000000e+00 : f32
    %17 = vector.broadcast %cst_12 : f32 to vector<1x32xf32>
    %18 = tpu.concatenate %17, %14, %17 in 0 : vector<1x32xf32>, vector<16x32xf32>, vector<1x32xf32> -> vector<18x32xf32>
    %19 = vector.extract_strided_slice %18 {offsets = [0, 0], sizes = [16, 32], strides = [1, 1]} : vector<18x32xf32> to vector<16x32xf32>
    %20 = vector.extract_strided_slice %18 {offsets = [1, 0], sizes = [16, 32], strides = [1, 1]} : vector<18x32xf32> to vector<16x32xf32>
    %21 = vector.extract_strided_slice %18 {offsets = [2, 0], sizes = [16, 32], strides = [1, 1]} : vector<18x32xf32> to vector<16x32xf32>
    %22 = tpu.concatenate %19, %20, %21 in 1 : vector<16x32xf32>, vector<16x32xf32>, vector<16x32xf32> -> vector<16x96xf32>
    %cst_13 = arith.constant dense<0.000000e+00> : vector<16x32xf32>
    %23 = tpu.matmul %22, %15, %cst_13 {dimension_numbers = #tpu.dot_dimension_numbers<[1], [0], [0], [1], [0, 0, 1, 1], [], []>} : vector<16x96xf32>, vector<96x32xf32>, vector<16x32xf32> -> vector<16x32xf32>
    %24 = vector.broadcast %16 : vector<1x32xf32> to vector<16x32xf32>
    %25 = arith.addf %23, %24 : vector<16x32xf32>
    %cst_14 = arith.constant 0.000000e+00 : f32
    %26 = vector.broadcast %cst_14 : f32 to vector<16x32xf32>
    %27 = arith.maximumf %25, %26 : vector<16x32xf32>
    %cst_15 = arith.constant dense<0.000000e+00> : vector<32xf32>
    %28 = vector.multi_reduction <add>, %27, %cst_15 [0] : vector<16x32xf32> to vector<32xf32>
    %29 = vector.shape_cast %28 : vector<32xf32> to vector<1x32xf32>
    %cst_16 = arith.constant 1.600000e+01 : f32
    %30 = vector.broadcast %cst_16 : f32 to vector<1x32xf32>
    %31 = arith.divf %29, %30 : vector<1x32xf32>
    %c1 = arith.constant 1 : index
    %c0_17 = arith.constant 0 : index
    %c0_18 = arith.constant 0 : index
    %32 = vector.load %arg1[%c1, %c0_17, %c0_18] : memref<2x16x4xf32, #tpu.memory_space<vmem>>, vector<1x16x4xf32>
    %33 = vector.shape_cast %32 : vector<1x16x4xf32> to vector<16x4xf32>
    %c0_19 = arith.constant 0 : index
    %c0_20 = arith.constant 0 : index
    %34 = vector.load %arg2[%c0_19, %c0_20] : memref<12x32xf32, #tpu.memory_space<vmem>>, vector<12x32xf32>
    %c0_21 = arith.constant 0 : index
    %c0_22 = arith.constant 0 : index
    %35 = vector.load %arg3[%c0_21, %c0_22] : memref<1x32xf32, #tpu.memory_space<vmem>>, vector<1x32xf32>
    %cst_23 = arith.constant 0.000000e+00 : f32
    %36 = vector.broadcast %cst_23 : f32 to vector<1x4xf32>
    %37 = tpu.concatenate %36, %33, %36 in 0 : vector<1x4xf32>, vector<16x4xf32>, vector<1x4xf32> -> vector<18x4xf32>
    %38 = vector.extract_strided_slice %37 {offsets = [0, 0], sizes = [16, 4], strides = [1, 1]} : vector<18x4xf32> to vector<16x4xf32>
    %39 = vector.extract_strided_slice %37 {offsets = [1, 0], sizes = [16, 4], strides = [1, 1]} : vector<18x4xf32> to vector<16x4xf32>
    %40 = vector.extract_strided_slice %37 {offsets = [2, 0], sizes = [16, 4], strides = [1, 1]} : vector<18x4xf32> to vector<16x4xf32>
    %41 = tpu.concatenate %38, %39, %40 in 1 : vector<16x4xf32>, vector<16x4xf32>, vector<16x4xf32> -> vector<16x12xf32>
    %cst_24 = arith.constant dense<0.000000e+00> : vector<16x32xf32>
    %42 = tpu.matmul %41, %34, %cst_24 {dimension_numbers = #tpu.dot_dimension_numbers<[1], [0], [0], [1], [0, 0, 1, 1], [], []>} : vector<16x12xf32>, vector<12x32xf32>, vector<16x32xf32> -> vector<16x32xf32>
    %43 = vector.broadcast %35 : vector<1x32xf32> to vector<16x32xf32>
    %44 = arith.addf %42, %43 : vector<16x32xf32>
    %cst_25 = arith.constant 0.000000e+00 : f32
    %45 = vector.broadcast %cst_25 : f32 to vector<16x32xf32>
    %46 = arith.maximumf %44, %45 : vector<16x32xf32>
    %c0_26 = arith.constant 0 : index
    %c0_27 = arith.constant 0 : index
    %47 = vector.load %arg4[%c0_26, %c0_27] : memref<96x32xf32, #tpu.memory_space<vmem>>, vector<96x32xf32>
    %c0_28 = arith.constant 0 : index
    %c0_29 = arith.constant 0 : index
    %48 = vector.load %arg5[%c0_28, %c0_29] : memref<1x32xf32, #tpu.memory_space<vmem>>, vector<1x32xf32>
    %cst_30 = arith.constant 0.000000e+00 : f32
    %49 = vector.broadcast %cst_30 : f32 to vector<1x32xf32>
    %50 = tpu.concatenate %49, %46, %49 in 0 : vector<1x32xf32>, vector<16x32xf32>, vector<1x32xf32> -> vector<18x32xf32>
    %51 = vector.extract_strided_slice %50 {offsets = [0, 0], sizes = [16, 32], strides = [1, 1]} : vector<18x32xf32> to vector<16x32xf32>
    %52 = vector.extract_strided_slice %50 {offsets = [1, 0], sizes = [16, 32], strides = [1, 1]} : vector<18x32xf32> to vector<16x32xf32>
    %53 = vector.extract_strided_slice %50 {offsets = [2, 0], sizes = [16, 32], strides = [1, 1]} : vector<18x32xf32> to vector<16x32xf32>
    %54 = tpu.concatenate %51, %52, %53 in 1 : vector<16x32xf32>, vector<16x32xf32>, vector<16x32xf32> -> vector<16x96xf32>
    %cst_31 = arith.constant dense<0.000000e+00> : vector<16x32xf32>
    %55 = tpu.matmul %54, %47, %cst_31 {dimension_numbers = #tpu.dot_dimension_numbers<[1], [0], [0], [1], [0, 0, 1, 1], [], []>} : vector<16x96xf32>, vector<96x32xf32>, vector<16x32xf32> -> vector<16x32xf32>
    %56 = vector.broadcast %48 : vector<1x32xf32> to vector<16x32xf32>
    %57 = arith.addf %55, %56 : vector<16x32xf32>
    %cst_32 = arith.constant 0.000000e+00 : f32
    %58 = vector.broadcast %cst_32 : f32 to vector<16x32xf32>
    %59 = arith.maximumf %57, %58 : vector<16x32xf32>
    %cst_33 = arith.constant dense<0.000000e+00> : vector<32xf32>
    %60 = vector.multi_reduction <add>, %59, %cst_33 [0] : vector<16x32xf32> to vector<32xf32>
    %61 = vector.shape_cast %60 : vector<32xf32> to vector<1x32xf32>
    %cst_34 = arith.constant 1.600000e+01 : f32
    %62 = vector.broadcast %cst_34 : f32 to vector<1x32xf32>
    %63 = arith.divf %61, %62 : vector<1x32xf32>
    %64 = tpu.concatenate %31, %63 in 0 : vector<1x32xf32>, vector<1x32xf32> -> vector<2x32xf32>
    %c0_35 = arith.constant 0 : index
    %c0_36 = arith.constant 0 : index
    %65 = vector.load %arg6[%c0_35, %c0_36] : memref<32x1xf32, #tpu.memory_space<vmem>>, vector<32x1xf32>
    %cst_37 = arith.constant dense<0.000000e+00> : vector<2x1xf32>
    %66 = tpu.matmul %64, %65, %cst_37 {dimension_numbers = #tpu.dot_dimension_numbers<[1], [0], [0], [1], [0, 0, 1, 1], [], []>} : vector<2x32xf32>, vector<32x1xf32>, vector<2x1xf32> -> vector<2x1xf32>
    %c0_38 = arith.constant 0 : index
    %c0_39 = arith.constant 0 : index
    %67 = vector.load %arg7[%c0_38, %c0_39] : memref<1x1xf32, #tpu.memory_space<vmem>>, vector<1x1xf32>
    %68 = vector.broadcast %67 : vector<1x1xf32> to vector<2x1xf32>
    %69 = arith.addf %66, %68 : vector<2x1xf32>
    %70 = math.absf %69 : vector<2x1xf32>
    %cst_40 = arith.constant 0.000000e+00 : f32
    %71 = vector.broadcast %cst_40 : f32 to vector<2x1xf32>
    %72 = arith.subf %71, %70 : vector<2x1xf32>
    %73 = math.exp %72 : vector<2x1xf32>
    %cst_41 = arith.constant 0.000000e+00 : f32
    %74 = vector.broadcast %cst_41 : f32 to vector<2x1xf32>
    %75 = arith.cmpf oge, %69, %74 : vector<2x1xf32>
    %cst_42 = arith.constant 1.000000e+00 : f32
    %76 = vector.broadcast %cst_42 : f32 to vector<2x1xf32>
    %77 = arith.addf %76, %73 : vector<2x1xf32>
    %cst_43 = arith.constant 1.000000e+00 : f32
    %78 = vector.broadcast %cst_43 : f32 to vector<2x1xf32>
    %79 = arith.divf %78, %77 : vector<2x1xf32>
    %cst_44 = arith.constant 1.000000e+00 : f32
    %80 = vector.broadcast %cst_44 : f32 to vector<2x1xf32>
    %81 = arith.addf %80, %73 : vector<2x1xf32>
    %82 = arith.divf %73, %81 : vector<2x1xf32>
    %83 = arith.select %75, %79, %82 : vector<2x1xi1>, vector<2x1xf32>
    %cst_45 = arith.constant 1.000000e+03 : f32
    %84 = vector.broadcast %cst_45 : f32 to vector<2x1xf32>
    %85 = arith.mulf %83, %84 : vector<2x1xf32>
    %c0_46 = arith.constant 0 : index
    %c0_47 = arith.constant 0 : index
    %86 = vector.load %arg8[%c0_46, %c0_47] : memref<2x1xf32, #tpu.memory_space<vmem>>, vector<2x1xf32>
    tpu.vector_store %arg8[%c0_46, %c0_47], %85 {strides = array<i32>} : memref<2x1xf32, #tpu.memory_space<vmem>>, vector<2x1xf32>,
    return
  }
  func.func @transform_0(%arg0: i32) -> (i32, i32, i32) {
    %c0_i32 = arith.constant 0 : i32
    %c0_i32_0 = arith.constant 0 : i32
    %c0_i32_1 = arith.constant 0 : i32
    %c0_i32_2 = arith.constant 0 : i32
    return %c0_i32, %c0_i32_0, %c0_i32_1 : i32, i32, i32
  }
  func.func @transform_1(%arg0: i32) -> (i32, i32) {
    %c0_i32 = arith.constant 0 : i32
    %c0_i32_0 = arith.constant 0 : i32
    %c0_i32_1 = arith.constant 0 : i32
    return %c0_i32, %c0_i32_0 : i32, i32
  }
  func.func @transform_2(%arg0: i32) -> (i32, i32) {
    %c0_i32 = arith.constant 0 : i32
    %c0_i32_0 = arith.constant 0 : i32
    %c0_i32_1 = arith.constant 0 : i32
    return %c0_i32, %c0_i32_0 : i32, i32
  }
  func.func @transform_3(%arg0: i32) -> (i32, i32) {
    %c0_i32 = arith.constant 0 : i32
    %c0_i32_0 = arith.constant 0 : i32
    %c0_i32_1 = arith.constant 0 : i32
    return %c0_i32, %c0_i32_0 : i32, i32
  }
  func.func @transform_4(%arg0: i32) -> (i32, i32) {
    %c0_i32 = arith.constant 0 : i32
    %c0_i32_0 = arith.constant 0 : i32
    %c0_i32_1 = arith.constant 0 : i32
    return %c0_i32, %c0_i32_0 : i32, i32
  }
  func.func @transform_5(%arg0: i32) -> (i32, i32) {
    %c0_i32 = arith.constant 0 : i32
    %c0_i32_0 = arith.constant 0 : i32
    %c0_i32_1 = arith.constant 0 : i32
    return %c0_i32, %c0_i32_0 : i32, i32
  }
  func.func @transform_6(%arg0: i32) -> (i32, i32) {
    %c0_i32 = arith.constant 0 : i32
    %c0_i32_0 = arith.constant 0 : i32
    %c0_i32_1 = arith.constant 0 : i32
    return %c0_i32, %c0_i32_0 : i32, i32
  }
  func.func @transform_7(%arg0: i32) -> (i32, i32) {
    %c0_i32 = arith.constant 0 : i32
    %c0_i32_0 = arith.constant 0 : i32
    %c0_i32_1 = arith.constant 0 : i32
    return %c0_i32, %c0_i32_0 : i32, i32
  }
}

</mosaic_0001>

<bundles_post_ra>
// kernel: conv1d_model_forward.1
= control target key start
LH: loop header
LB: loop body
LE: loop exit
PB: predicated region body
PF: predicated region fallthrough
CT: control target
= control target key end

     0   :  { %vm35_vm0 = vcmask 1040384   ;;  %vm89_vm1 = vcmask 1043456   ;;  %vm58_vm2 = vcmask 1045504   ;;  %vm46_vm3 = vcmask 1046528   ;;  %s830_s13 = smov 32   ;;  %s1018_s0 = inlined_call_operand.vmem [shape: f32[2,16,4], index: 0, kind: input, shape index: {}]   ;;  %s1019_s1 = inlined_call_operand.vmem [shape: f32[12,32], index: 1, kind: input, shape index: {}]   ;;  %s1020_s3 = inlined_call_operand.vmem [shape: f32[96,32], index: 3, kind: input, shape index: {}]   ;;  %s1021_s2 = inlined_call_operand.vmem [shape: f32[1,32], index: 2, kind: input, shape index: {}]   ;;  %s1022_s5 = inlined_call_operand.vmem [shape: f32[32,1], index: 5, kind: input, shape index: {}]   ;;  %s1023_s6 = inlined_call_operand.<no memory space> [shape: f32[1,1], index: 6, kind: input, shape index: {}]   ;;  %s1024_s4 = inlined_call_operand.vmem [shape: f32[1,32], index: 4, kind: input, shape index: {}]   ;;  %s1025_s7 = inlined_call_operand.vmem [shape: f32[2,1], index: 7, kind: output, shape index: {}]  }
   0x1   :  { %v28_v0 = vld [vmem:[%s1018_s0] sm:$0xff]  ;;  %v29_v1 = vld [vmem:[%s1018_s0 + $0x8] sm:$0xff]  ;;  %v688_v2 = vld [vmem:[%s1018_s0 + $0x10] sm:$0xff]  ;;  %vm70_vm4 = vcmask 31744   ;;  %vm73_vm5 = vcmask 64512   ;;  %vm82_vm6 = vcmask 97280  }
   0x2   :  { %v36_v3 = vrot.slane %v28_v0, 7  ;;  %v37_v4 = vrot.slane %v29_v1, 7  ;;  %v689_v5 = vld [vmem:[%s1018_s0 + $0x18] sm:$0xff]  ;;  %v329_v6 = vrot.slane %v688_v2, 7  ;;  %v31_v7 = vld [vmem:[%s1019_s1 + $0x8] sm:$0xf] }
   0x3   :  { %v330_v8 = vrot.slane %v689_v5, 7  ;;  %738 = vmatprep.subr.msk.mxu0 %vm89_vm1, %v31_v7  ;;  %v30_v9 = vld [vmem:[%s1019_s1] sm:$0xff]  ;;  %s827_s0 = smov 8   ;;  %s828_s1 = smov 4   ;;  %v181_v52 = vld [vmem:[%s1020_s3 + $0x58] sm:$0xff]  ;;  %v180_v53 = vld [vmem:[%s1020_s3 + $0x50] sm:$0xff] }
   0x4   :  { %v38_v10 = vsel %vm35_vm0, %v36_v3, %v37_v4  ;;  %v42_v11 = vsel %vm35_vm0, 0.0, %v36_v3  ;;  %v43_v12 = vsel %vm35_vm0, %v37_v4, 0.0  ;;  %v335_v13 = vsel %vm35_vm0, 0.0, %v329_v6  ;;  %739 = vmatpush3.msk.msra.mxu0 %vm89_vm1, %v31_v7  ;;  %745 = vmatprep.subr.mxu1 %v181_v52  ;;  %v179_v54 = vld [vmem:[%s1020_s3 + $0x48] sm:$0xff]  ;;  %v178_v55 = vld [vmem:[%s1020_s3 + $0x40] sm:$0xff]  ;;  %v177_v56 = vld [vmem:[%s1020_s3 + $0x38] sm:$0xff] }
   0x5   :  { %v59_v14 = vrot.slane %v42_v11, 2  ;;  %v60_v15 = vrot.slane %v38_v10, 2  ;;  %v47_v16 = vrot.slane %v42_v11, 1  ;;  %v48_v17 = vrot.slane %v38_v10, 1  ;;  %740 = vmatprep.subr.mxu0 %v30_v9  ;;  %746 = vmatpush3.msra.mxu1 %v181_v52  ;;  %v176_v57 = vld [vmem:[%s1020_s3 + $0x30] sm:$0xff]  ;;  %v175_v60 = vld [vmem:[%s1020_s3 + $0x28] sm:$0xff] }
   0x6   :  { %v62_v18 = vrot.slane %v43_v12, 2  ;;  %v50_v19 = vrot.slane %v43_v12, 1  ;;  %v331_v20 = vsel %vm35_vm0, %v329_v6, %v330_v8  ;;  %v336_v21 = vsel %vm35_vm0, %v330_v8, 0.0  ;;  %741 = vmatpush3.msra.mxu0 %v30_v9  ;;  %747 = vmatprep.subr.mxu1 %v180_v53  ;;  %v681_v58 = vld [vmem:[%s1021_s2] ss:$0 sm:$0xff]  ;;  %v173_v2 = vld [vmem:[%s1020_s3 + $0x18] sm:$0xff] }
   0x7   :  { %v61_v22 = vsel %vm58_vm2, %v59_v14, %v60_v15  ;;  %v49_v23 = vsel %vm46_vm3, %v47_v16, %v48_v17  ;;  %772 = vmatprep.subr.msk.mxu0 %vm89_vm1, %v31_v7  ;;  %v340_v24 = vrot.slane %v331_v20, 1  ;;  %v342_v27 = vrot.slane %v336_v21, 1  ;;  %748 = vmatpush3.msra.mxu1 %v180_v53  ;;  %v174_v63 = vld [vmem:[%s1020_s3 + $0x20] sm:$0xff]  ;;  %v172_v3 = vld [vmem:[%s1020_s3 + $0x10] sm:$0xff]  ;;  %v171_v8 = vld [vmem:[%s1020_s3 + $0x8] sm:$0xff] }
   0x8   :  { %64 = vrot.lane.b32.xlu1 %v61_v22, %s827_s0  ;;  %52 = vrot.lane.b32.xlu0 %v49_v23, %s828_s1  ;;  %v63_v25 = vsel %vm58_vm2, %v60_v15, %v62_v18  ;;  %v51_v26 = vsel %vm46_vm3, %v48_v17, %v50_v19  ;;  %v339_v28 = vrot.slane %v335_v13, 1  ;;  %v351_v29 = vrot.slane %v331_v20, 2 }
   0x9   :  { %v343_v30 = vsel %vm46_vm3, %v340_v24, %v342_v27  ;;  %v353_v32 = vrot.slane %v336_v21, 2  ;;  %v350_v33 = vrot.slane %v335_v13, 2  ;;  %749 = vmatprep.subr.mxu1 %v179_v54  ;;  %vm217_vm7 = vcmask 261120  }
   0xa   :  { %v341_v31 = vsel %vm46_vm3, %v339_v28, %v340_v24  ;;  %750 = vmatpush3.msra.mxu1 %v179_v54  ;;  %vm220_vm8 = vcmask 523264   ;;  %vm229_vm9 = vcmask 785408   ;;  %vm832_vm10 = vmmov 0  }
   0xb   :  { %v354_v34 = vsel %vm58_vm2, %v351_v29, %v353_v32  ;;  %v352_v35 = vsel %vm58_vm2, %v350_v33, %v351_v29  ;;  %751 = vmatprep.subr.mxu1 %v178_v55  ;;  %vm675_vm12 = vcmask 1024  }
   0xc   :  { %66 = vrot.lane.b32.xlu1 %v63_v25, %s827_s0  ;;  %54 = vrot.lane.b32.xlu0 %v51_v26, %s828_s1 }
   0xd   :  { %752 = vmatpush3.msra.mxu1 %v178_v55 }
   0xe   :  { %753 = vmatprep.subr.mxu1 %v177_v56 }
   0xf   :  { %754 = vmatpush3.msra.mxu1 %v177_v56 }
  0x10   :  { %346 = vrot.lane.b32.xlu1 %v343_v30, %s828_s1  ;;  %344 = vrot.lane.b32.xlu0 %v341_v31, %s828_s1 }
  0x11   :  { %755 = vmatprep.subr.mxu1 %v176_v57 }
  0x12   :  { %756 = vmatpush3.msra.mxu1 %v176_v57 }
  0x13   :  { %757 = vmatprep.subr.mxu1 %v175_v60 }
  0x14   :  { %357 = vrot.lane.b32.xlu1 %v354_v34, %s827_s0  ;;  %355 = vrot.lane.b32.xlu0 %v352_v35, %s827_s0 }
  0x15   :  { %758 = vmatpush3.msra.mxu1 %v175_v60 }
  0x16   :  { %759 = vmatprep.subr.mxu1 %v174_v63 }
  0x17   :  { %760 = vmatpush3.msra.mxu1 %v174_v63 }
  0x18   :  { %761 = vmatprep.subr.mxu1 %v173_v2 }
  0x19   :  { %762 = vmatpush3.msra.mxu1 %v173_v2 }
  0x1a   :  { %763 = vmatprep.subr.mxu1 %v172_v3 }
  0x1b   :  { %764 = vmatpush3.msra.mxu1 %v172_v3 }
  0x1c   :  { %765 = vmatprep.subr.mxu1 %v171_v8 }
  0x1d   :  { %766 = vmatpush3.msra.mxu1 %v171_v8 }
  0x7a   :  { %v65_v36 = vpop.permute.xlu1 %64  ;;  %v53_v37 = vpop.permute.xlu0 %52 }
  0x7b   :  { %v71_v38 = vsel %vm70_vm4, %v42_v11, %v53_v37 }
  0x7c   :  { %v74_v39 = vsel %vm73_vm5, %v71_v38, %v65_v36 }
  0x7d   :  { %742 = vmatprep.mubr.msk.f32.mxu0 %vm82_vm6, %v74_v39 }
  0x7e   :  { %v67_v40 = vpop.permute.xlu1 %66  ;;  %v55_v41 = vpop.permute.xlu0 %54 }
  0x7f   :  { %v72_v42 = vsel %vm70_vm4, %v38_v10, %v55_v41 }
  0x80   :  { %v75_v43 = vsel %vm73_vm5, %v72_v42, %v67_v40 }
  0x81   :  { %743 = vmatmul.mubr.msk.f32.vlgmr.msra.gmra.mxu0 %vm82_vm6, %v75_v43 }
  0x82   :  { %v347_v44 = vpop.permute.xlu1 %346  ;;  %v345_v45 = vpop.permute.xlu0 %344  ;;  %773 = vmatpush3.msk.msra.mxu0 %vm89_vm1, %v31_v7 }
  0x83   :  { %774 = vmatprep.subr.mxu0 %v30_v9  ;;  %v362_v46 = vsel %vm70_vm4, %v331_v20, %v347_v44  ;;  %v361_v47 = vsel %vm70_vm4, %v335_v13, %v345_v45 }
  0x84   :  { %775 = vmatpush3.msra.mxu0 %v30_v9  ;;  %v170_v9 = vld [vmem:[%s1020_s3] sm:$0xff]  ;;  %s829_s3 = smov 64  }
  0x85   :  { %779 = vmatprep.subr.mxu0 %v181_v52  ;;  %767 = vmatprep.subr.mxu1 %v170_v9 }
  0x86   :  { %v358_v48 = vpop.permute.xlu1 %357  ;;  %v356_v49 = vpop.permute.xlu0 %355  ;;  %768 = vmatpush3.msra.mxu1 %v170_v9 }
  0x87   :  { %v364_v50 = vsel %vm73_vm5, %v362_v46, %v358_v48  ;;  %v363_v51 = vsel %vm73_vm5, %v361_v47, %v356_v49 }
  0x88   :  { %776 = vmatprep.mubr.msk.f32.mxu0 %vm82_vm6, %v363_v51 }
  0x89   :  { %777 = vmatmul.mubr.msk.f32.vlgmr.msra.gmra.mxu0 %vm82_vm6, %v364_v50 }
  0x8a   :  { %780 = vmatpush3.msra.mxu0 %v181_v52 }
  0x8b   :  { %781 = vmatprep.subr.mxu0 %v180_v53 }
  0x8c   :  { %782 = vmatpush3.msra.mxu0 %v180_v53 }
  0x8d   :  { %783 = vmatprep.subr.mxu0 %v179_v54 }
  0x8e   :  { %784 = vmatpush3.msra.mxu0 %v179_v54 }
  0x8f   :  { %785 = vmatprep.subr.mxu0 %v178_v55 }
  0x90   :  { %786 = vmatpush3.msra.mxu0 %v178_v55 }
  0x91   :  { %787 = vmatprep.subr.mxu0 %v177_v56 }
  0x92   :  { %788 = vmatpush3.msra.mxu0 %v177_v56 }
  0x93   :  { %789 = vmatprep.subr.mxu0 %v176_v57 }
  0x94   :  { %790 = vmatpush3.msra.mxu0 %v176_v57 }
  0x95   :  { %791 = vmatprep.subr.mxu0 %v175_v60 }
  0x96   :  { %792 = vmatpush3.msra.mxu0 %v175_v60  ;;  %v583_v60 = vld [vmem:[%s1022_s5 + $0x18] sm:$0xff] }
  0x97   :  { %793 = vmatprep.subr.mxu0 %v174_v63 }
  0x98   :  { %794 = vmatpush3.msra.mxu0 %v174_v63  ;;  %v580_v63 = vld [vmem:[%s1022_s5] sm:$0xff] }
  0x99   :  { %795 = vmatprep.subr.mxu0 %v173_v2 }
  0x9a   :  { %796 = vmatpush3.msra.mxu0 %v173_v2 }
  0x9b   :  { %797 = vmatprep.subr.mxu0 %v172_v3 }
  0x9c   :  { %798 = vmatpush3.msra.mxu0 %v172_v3 }
  0x9d   :  { %799 = vmatprep.subr.mxu0 %v171_v8 }
  0x9e   :  { %800 = vmatpush3.msra.mxu0 %v171_v8 }
  0x9f   :  { %801 = vmatprep.subr.mxu0 %v170_v9 }
  0xa0   :  { %802 = vmatpush3.msra.mxu0 %v170_v9 }
 0x141   :  { %v744_v59 = vpop.f32.mrf.mxu0 }
 0x142   :  { %v165_v61 = vadd.f32 %v744_v59, %v681_v58  ;;  %v831_v59 = vmov 0.0  }
 0x143   :  { %v159_v62 = vpop.f32.mrf.mxu0  ;;  %806 = vmatprep.subr.mxu1 %v831_v59 }
 0x144   :  { %v169_v0 = vmax.f32 %v165_v61, 0.0  ;;  %v160_v1 = vadd.f32 %v681_v58, %v159_v62  ;;  %v582_v61 = vld [vmem:[%s1022_s5 + $0x10] sm:$0xff]  ;;  %v581_v62 = vld [vmem:[%s1022_s5 + $0x8] sm:$0xff] }
 0x146   :  { %v168_v4 = vmax.f32 %v160_v1, 0.0  ;;  %v186_v5 = vrot.slane %v169_v0, 7  ;;  %v12_v0 = vstv %s1023_s6  ;;  %v685_v1 = vld [vmem:[%s1024_s4] ss:$0 sm:$0xff] }
 0x147   :  { %13 = vst [vmem:[#allocation2] sm:$0x1] %v12_v0 }
 0x148   :  { %v185_v6 = vrot.slane %v168_v4, 7  ;;  %v192_v18 = vsel %vm35_vm0, %v186_v5, 0.0 }
 0x149   :  { %v778_v7 = vpop.f32.mrf.mxu0  ;;  %v198_v25 = vrot.slane %v192_v18, 1  ;;  %v209_v38 = vrot.slane %v192_v18, 2 }
 0x14a   :  { %v961_v10 = vsel %vm35_vm0, %v185_v6, %v186_v5  ;;  %v191_v11 = vsel %vm35_vm0, 0.0, %v185_v6  ;;  %v443_v12 = vadd.f32 %v778_v7, %v681_v58 }
 0x14b   :  { %v195_v13 = vrot.slane %v191_v11, 1  ;;  %v206_v14 = vrot.slane %v191_v11, 2  ;;  %v437_v15 = vpop.f32.mrf.mxu0  ;;  %v207_v16 = vrot.slane %v961_v10, 2  ;;  %v196_v17 = vrot.slane %v961_v10, 1 }
 0x14c   :  { %v447_v19 = vmax.f32 %v443_v12, 0.0  ;;  %v438_v20 = vadd.f32 %v681_v58, %v437_v15 }
 0x14d   :  { %v208_v21 = vsel %vm58_vm2, %v206_v14, %v207_v16  ;;  %v197_v22 = vsel %vm46_vm3, %v195_v13, %v196_v17  ;;  %v199_v28 = vsel %vm46_vm3, %v196_v17, %v198_v25  ;;  %v210_v39 = vsel %vm58_vm2, %v207_v16, %v209_v38 }
 0x14e   :  { %v451_v23 = vrot.slane %v447_v19, 7  ;;  %v446_v24 = vmax.f32 %v438_v20, 0.0  ;;  %211 = vrot.lane.b32.xlu1 %v208_v21, %s829_s3  ;;  %200 = vrot.lane.b32.xlu0 %v197_v22, %s830_s13 }
 0x150   :  { %v457_v26 = vsel %vm35_vm0, %v451_v23, 0.0  ;;  %v450_v27 = vrot.slane %v446_v24, 7 }
 0x151   :  { %v463_v31 = vrot.slane %v457_v26, 1  ;;  %v474_v41 = vrot.slane %v457_v26, 2 }
 0x152   :  { %v452_v29 = vsel %vm35_vm0, %v450_v27, %v451_v23  ;;  %v456_v30 = vsel %vm35_vm0, 0.0, %v450_v27  ;;  %202 = vrot.lane.b32.xlu0 %v199_v28, %s830_s13 }
 0x153   :  { %v460_v32 = vrot.slane %v456_v30, 1  ;;  %v461_v33 = vrot.slane %v452_v29, 1  ;;  %v471_v34 = vrot.slane %v456_v30, 2  ;;  %v472_v37 = vrot.slane %v452_v29, 2 }
 0x155   :  { %v464_v35 = vsel %vm46_vm3, %v461_v33, %v463_v31  ;;  %v462_v36 = vsel %vm46_vm3, %v460_v32, %v461_v33  ;;  %v473_v40 = vsel %vm58_vm2, %v471_v34, %v472_v37  ;;  %v475_v42 = vsel %vm58_vm2, %v472_v37, %v474_v41 }
 0x156   :  { %467 = vrot.lane.b32.xlu0 %v464_v35, %s830_s13  ;;  %465 = vrot.lane.b32.xlu1 %v462_v36, %s830_s13  ;;  %v695_v35 = vld [vmem:[#allocation2] ss:$0 sm:$0xff] }
 0x15a   :  { %213 = vrot.lane.b32.xlu0 %v210_v39, %s829_s3  ;;  %476 = vrot.lane.b32.xlu1 %v473_v40, %s829_s3 }
 0x15e   :  { %478 = vrot.lane.b32.xlu1 %v475_v42, %s829_s3 }
 0x1c0   :  { %v212_v43 = vpop.permute.xlu1 %211  ;;  %v201_v44 = vpop.permute.xlu0 %200 }
 0x1c1   :  { %v218_v45 = vsel %vm217_vm7, %v191_v11, %v201_v44 }
 0x1c2   :  { %v221_v46 = vsel %vm220_vm8, %v218_v45, %v212_v43 }
 0x1c3   :  { %769 = vmatprep.mubr.msk.f32.mxu1 %vm229_vm9, %v221_v46 }
 0x1c4   :  { %v203_v47 = vpop.permute.xlu0 %202 }
 0x1c5   :  { %v219_v50 = vsel %vm217_vm7, %v961_v10, %v203_v47 }
 0x1c8   :  { %v466_v48 = vpop.permute.xlu1 %465  ;;  %v468_v49 = vpop.permute.xlu0 %467 }
 0x1c9   :  { %v482_v51 = vsel %vm217_vm7, %v456_v30, %v466_v48  ;;  %v483_v56 = vsel %vm217_vm7, %v452_v29, %v468_v49 }
 0x1cc   :  { %v477_v52 = vpop.permute.xlu1 %476  ;;  %v214_v53 = vpop.permute.xlu0 %213 }
 0x1cd   :  { %v484_v54 = vsel %vm220_vm8, %v482_v51, %v477_v52  ;;  %v222_v55 = vsel %vm220_vm8, %v219_v50, %v214_v53 }
 0x1ce   :  { %770 = vmatmul.mubr.msk.f32.vlgmr.msra.gmra.mxu1 %vm229_vm9, %v222_v55  ;;  %803 = vmatprep.mubr.msk.f32.mxu0 %vm229_vm9, %v484_v54 }
 0x1cf   :  { %807 = vmatpush3.msra.mxu1 %v583_v60  ;;  %814 = vmatprep.mubr.msk.f32.mxu1 %vm832_vm10, %v831_v59 }
 0x1d0   :  { %v479_v57 = vpop.permute.xlu1 %478  ;;  %808 = vmatprep.subr.mxu1 %v831_v59 }
 0x1d1   :  { %v485_v58 = vsel %vm220_vm8, %v483_v56, %v479_v57  ;;  %809 = vmatpush3.msra.mxu1 %v582_v61 }
 0x1d2   :  { %804 = vmatmul.mubr.msk.f32.vlgmr.msra.gmra.mxu0 %vm229_vm9, %v485_v58  ;;  %810 = vmatprep.subr.mxu1 %v831_v59 }
 0x1d3   :  { %811 = vmatpush3.msra.mxu1 %v581_v62 }
 0x1d4   :  { %812 = vmatprep.subr.mxu1 %v831_v59 }
 0x1d5   :  { %813 = vmatpush3.msra.mxu1 %v580_v63 }
 0x28e   :  { %v771_v2 = vpop.f32.mrf.mxu1 }
 0x28f   :  { %v308_v3 = vadd.f32 %v771_v2, %v685_v1 }
 0x290   :  { %v302_v4 = vpop.f32.mrf.mxu1 }
 0x291   :  { %v312_v5 = vmax.f32 %v308_v3, 0.0  ;;  %v303_v6 = vadd.f32 %v685_v1, %v302_v4 }
 0x292   :  { %v805_v7 = vpop.f32.mrf.mxu0 }
 0x293   :  { %v311_v8 = vmax.f32 %v303_v6, 0.0  ;;  %v564_v9 = vadd.f32 %v805_v7, %v685_v1  ;;  %v314_v11 = vsel %vm217_vm7, %v312_v5, 0.0 }
 0x294   :  { %v558_v10 = vpop.f32.mrf.mxu0 }
 0x295   :  { %v313_v12 = vsel %vm217_vm7, %v311_v8, 0.0  ;;  %v568_v13 = vmax.f32 %v564_v9, 0.0  ;;  %v559_v14 = vadd.f32 %v685_v1, %v558_v10 }
 0x296   :  { %v315_v15 = vadd.f32 %v314_v11, %v313_v12 }
 0x297   :  { %v567_v16 = vmax.f32 %v559_v14, 0.0  ;;  %v570_v18 = vsel %vm217_vm7, %v568_v13, 0.0 }
 0x298   :  { %v316_v17 = vrot.slane %v315_v15, 4 }
 0x299   :  { %v569_v19 = vsel %vm217_vm7, %v567_v16, 0.0 }
 0x29a   :  { %v317_v20 = vadd.f32 %v316_v17, %v315_v15  ;;  %v571_v21 = vadd.f32 %v570_v18, %v569_v19 }
 0x29c   :  { %v318_v22 = vrot.slane %v317_v20, 2  ;;  %v572_v23 = vrot.slane %v571_v21, 4 }
 0x29e   :  { %v319_v24 = vadd.f32 %v318_v22, %v317_v20  ;;  %v573_v25 = vadd.f32 %v572_v23, %v571_v21 }
 0x2a0   :  { %v320_v26 = vrot.slane %v319_v24, 1  ;;  %v574_v27 = vrot.slane %v573_v25, 2 }
 0x2a2   :  { %v575_v28 = vadd.f32 %v574_v27, %v573_v25  ;;  %v321_v29 = vadd.f32 %v320_v26, %v319_v24 }
 0x2a4   :  { %v576_v30 = vrot.slane %v575_v28, 1  ;;  %v323_v32 = vmul.f32 0.0625, %v321_v29 }
 0x2a6   :  { %v577_v31 = vadd.f32 %v576_v30, %v575_v28 }
 0x2a8   :  { %v578_v33 = vmul.f32 0.0625, %v577_v31 }
 0x2aa   :  { %v579_v34 = vsel %vm35_vm0, %v323_v32, %v578_v33 }
 0x2ab   :  { %815 = vmatmul.mubr.msk.f32.vlgmr.msra.gmra.mxu1 %vm217_vm7, %v579_v34 }
 0x36b   :  { %v660_v36 = vpop.f32.mrf.mxu1 }
 0x36c   :  { %v661_v37 = vadd.f32 %v695_v35, %v660_v36 }
 0x36d   :  { %v816_v38 = vpop.f32.mrf.mxu1 }
 0x36e   :  { %v664_v39 = vand.u32 2147483647, %v661_v37  ;;  %vm668_vm11 = vcmp.ge.f32.partialorder %v661_v37, 0.0 }
 0x370   :  { %v665_v40 = vsub.f32 0.0, %v664_v39 }
 0x372   :  { %v666_v41 = vmul.f32 1.442695, %v665_v40 }
 0x374   :  { %823 = vpow2.f32 %v666_v41 }
 0x381   :  { %v824_v42 = vpop.eup %823 }
 0x382   :  { %v669_v43 = vadd.f32 1.0, %v824_v42 }
 0x384   :  { %825 = vrcp.f32 %v669_v43 }
 0x391   :  { %v826_v44 = vpop.eup %825 }
 0x392   :  { %v672_v45 = vmul.f32 %v826_v44, %v824_v42 }
 0x394   :  { %v673_v46 = vsel %vm668_vm11, %v826_v44, %v672_v45 }
 0x395   :  { %v674_v47 = vmul.f32 1000.0, %v673_v46 }
 0x397   :  { %676 = vst.msk [vmem:[%s1025_s7] sm:$0x3] %vm675_vm12, %v674_v47 }

</bundles_post_ra>
